<compile_context>
chip_gen: v6e
topology: v6e:2x2x1
jax: 0.10.0
libtpu: 0.0.40
codegen_flags: <defaults>
</compile_context>

<pallas_src>
import functools

import jax
import jax.numpy as jnp
from jax import lax
from jax.experimental import pallas as pl
from jax.experimental.pallas import tpu as pltpu


def _mha_kernel(q_ref, k_ref, v_ref, wp_ref, bp_ref, o_ref, wav_ref):
    """One (batch, query-tile, head-block) step of fused attention + out-proj."""
    hi = pl.program_id(2)
    hb, tq, hd = q_ref.shape
    n_hblocks = wav_ref.shape[0]
    bf16_math = q_ref.dtype == jnp.bfloat16

    q = q_ref[...]                       # (hb, tq, hd), softmax scale pre-folded
    k = k_ref[...]                       # (hb, N, hd)
    v = v_ref[...]                       # (hb, N, hd)

    # Scores: head-batched, contraction over hd, no explicit K transpose.
    s = lax.dot_general(q, k, (((2,), (2,)), ((0,), (0,))),
                        preferred_element_type=jnp.float32)      # (hb, tq, N)
    m = jnp.max(s, axis=-1, keepdims=True)
    z = s - m
    # bf16 exp for bf16 models (v6e/v7x EUP); f32 models (and v5e) keep f32.
    p = jnp.exp(z.astype(jnp.bfloat16)) if bf16_math else jnp.exp(z)
    l = jnp.sum(p.astype(jnp.float32), axis=-1, keepdims=True)   # (hb, tq, 1)

    pv = lax.dot_general(p.astype(v.dtype), v, (((2,), (1,)), ((0,), (0,))),
                         preferred_element_type=jnp.float32)     # (hb, tq, hd)
    # Normalize the small (hb, tq, hd) result instead of the (hb, tq, N) probs.
    weighted = pv * pl.reciprocal(l, approx=bf16_math)

    # Stash this head block's output in its slice of the wav scratch
    # (head-block page hi; static per-head column slices within the page).
    for j in range(hb):                                          # static unroll
        wav_ref[hi, :, j * hd:(j + 1) * hd] = weighted[j].astype(wav_ref.dtype)

    # Last head block: fused output projection against the resident w_proj,
    # contraction depth hb*hd (>=128) per matmul instead of hd.
    @pl.when(hi == pl.num_programs(2) - 1)
    def _():
        acc = jnp.dot(wav_ref[0], wp_ref[0], preferred_element_type=jnp.float32)
        for g in range(1, n_hblocks):                            # static unroll
            acc = acc + jnp.dot(wav_ref[g], wp_ref[g],
                                preferred_element_type=jnp.float32)
        o_ref[...] = (acc + bp_ref[...]).astype(o_ref.dtype)


def _pick_head_block(n_heads, head_dim):
    # Pack heads so the packed width hb*hd reaches the MXU width (256 on
    # v6e/v7x; 128 already fills v5e) while dividing n_heads evenly.
    hb = max(1, min(n_heads, 256 // max(head_dim, 1)))
    while n_heads % hb:
        hb -= 1
    return max(hb, 1)


def _pick_q_tile(n_tokens, batch):
    # <=256 keeps the (hb, tq, N) f32 score slab and the (tq, D) output block
    # comfortable inside v7x's 64 MiB VMEM; prefer a split that gives both v7x
    # TensorCores work when batch == 1.
    for t in (256, 128):
        if n_tokens % t == 0 and (batch >= 2 or n_tokens // t >= 2):
            return t
    for t in (256, 128):
        if n_tokens % t == 0:
            return t
    return n_tokens


def _vmem_limit_bytes(n_tokens, d, tq, hb, hd, n_hblocks, itemsize):
    est = (
        2 * hb * tq * hd * itemsize              # q block (double-buffered)
        + 2 * 2 * hb * n_tokens * hd * itemsize  # k + v blocks (double-buffered)
        + 2 * n_hblocks * hb * hd * d * itemsize  # resident w_proj (+ safety)
        + 2 * tq * d * itemsize                  # output block (double-buffered)
        + n_hblocks * tq * hb * hd * itemsize    # wav scratch
        + 3 * hb * tq * n_tokens * 4             # f32 score / prob temporaries
        + (1 << 20)                              # headroom
    )
    try:
        cap = int(getattr(pltpu.get_tpu_info(), "vmem_capacity_bytes", 64 << 20))
    except Exception:
        cap = 64 << 20
    return int(min(max(2 * est, 16 << 20), int(0.9 * cap)))


def self_attention(x, w_qkv, b_qkv, w_proj, b_proj, *, n_heads):
    """x: (B, N, D); w_qkv: (D, 3D); b_qkv: (3D,); w_proj: (D, D); b_proj: (D,).

    Linear weights are stored as (in_features, out_features), i.e. PyTorch W^T,
    so y = x @ W + b matches nn.Linear.
    """
    B, N, D = x.shape
    assert D % n_heads == 0, "dim must be divisible by n_heads"
    hd = D // n_heads
    scale = hd ** (-0.5)

    # QKV projection as a plain XLA GEMM (roofline there; avoids per-query-tile
    # K/V recompute inside the kernel grid). Softmax scale folded into q.
    qkv = x @ w_qkv + b_qkv                               # (B, N, 3D)
    qkv = qkv.reshape(B, N, 3, n_heads, hd)
    qkv = jnp.transpose(qkv, (2, 0, 3, 1, 4))             # (3, B, H, N, hd)
    q = qkv[0] * scale
    k = qkv[1]
    v = qkv[2]

    hb = _pick_head_block(n_heads, hd)
    n_hblocks = n_heads // hb
    tq = _pick_q_tile(N, B)
    grid = (B, N // tq, n_hblocks)

    # Head-block view of the projection weight: row (g, j*hd + d) of wp equals
    # row (g*hb + j)*hd + d of w_proj -> a contiguous reshape, no copy/transpose.
    wp = w_proj.reshape(n_hblocks, hb * hd, D)
    bp = b_proj.reshape(1, D)

    vmem_limit = _vmem_limit_bytes(N, D, tq, hb, hd, n_hblocks, x.dtype.itemsize)

    return pl.pallas_call(
        _mha_kernel,
        out_shape=jax.ShapeDtypeStruct((B, N, D), x.dtype),
        grid_spec=pltpu.PrefetchScalarGridSpec(
            num_scalar_prefetch=0,
            grid=grid,
            in_specs=[
                # q tile for this (batch, head block, query tile)
                pl.BlockSpec((None, hb, tq, hd), lambda b, qi, hi: (b, hi, qi, 0)),
                # full-length K / V for this (batch, head block)
                pl.BlockSpec((None, hb, N, hd), lambda b, qi, hi: (b, hi, 0, 0)),
                pl.BlockSpec((None, hb, N, hd), lambda b, qi, hi: (b, hi, 0, 0)),
                # output projection weight/bias: constant block index -> DMA'd
                # once and held resident in VMEM for the whole grid.
                pl.BlockSpec((n_hblocks, hb * hd, D), lambda b, qi, hi: (0, 0, 0)),
                pl.BlockSpec((1, D), lambda b, qi, hi: (0, 0)),
            ],
            out_specs=pl.BlockSpec((None, tq, D), lambda b, qi, hi: (b, qi, 0)),
            # Per-head-block normalized attention outputs (read on last head block).
            scratch_shapes=[pltpu.VMEM((n_hblocks, tq, hb * hd), x.dtype)],
        ),
        compiler_params=pltpu.CompilerParams(
            dimension_semantics=("parallel", "parallel", "arbitrary"),
            vmem_limit_bytes=vmem_limit),
    )(q, k, v, wp, bp)


def self_attention_ref(x, w_qkv, b_qkv, w_proj, b_proj, *, n_heads):
    """Pure-JAX reference mirroring the PyTorch forward."""
    B, N, D = x.shape
    hd = D // n_heads
    scale = hd ** (-0.5)
    qkv = x @ w_qkv + b_qkv                              # (B, N, 3D)
    qkv = qkv.reshape(B, N, 3, n_heads, hd)
    qkv = jnp.transpose(qkv, (2, 0, 3, 1, 4))            # (3, B, H, N, hd)
    q, k, v = qkv[0], qkv[1], qkv[2]
    dp = jnp.einsum('bhnd,bhmd->bhnm', q, k) * scale
    attn = jax.nn.softmax(dp, axis=-1)
    wav = jnp.einsum('bhnm,bhmd->bhnd', attn, v)         # (B, H, N, hd)
    wav = jnp.transpose(wav, (0, 2, 1, 3)).reshape(B, N, D)
    return wav @ w_proj + b_proj


if __name__ == "__main__":
    # Small shapes: batch=2, tokens=8, dim=32, heads=4 (head_dim=8)
    B, N, D, H = 2, 8, 32, 4

    key = jax.random.PRNGKey(0)
    kx, kw1, kb1, kw2, kb2 = jax.random.split(key, 5)

    x = jax.random.normal(kx, (B, N, D), dtype=jnp.float32)

    # Deterministic parameter init (stored as (in, out), i.e. PyTorch W^T)
    w_qkv = jax.random.normal(kw1, (D, 3 * D), dtype=jnp.float32) * 0.05
    b_qkv = jax.random.normal(kb1, (3 * D,), dtype=jnp.float32) * 0.05
    w_proj = jax.random.normal(kw2, (D, D), dtype=jnp.float32) * 0.05
    b_proj = jax.random.normal(kb2, (D,), dtype=jnp.float32) * 0.05

    attn_fn = jax.jit(functools.partial(self_attention, n_heads=H))
    out = jax.block_until_ready(attn_fn(x, w_qkv, b_qkv, w_proj, b_proj))

    ref = self_attention_ref(x, w_qkv, b_qkv, w_proj, b_proj, n_heads=H)
    assert out.shape == (B, N, D)
    assert jnp.allclose(out, ref, atol=1e-4, rtol=1e-4), "mismatch vs reference"

    print("KERNEL_OK")
</pallas_src>

<mosaic_0001>
module attributes {stable_mosaic.version = 11 : i64} {
  func.func @_mha_kernel(%arg0: i32, %arg1: i32, %arg2: i32, %arg3: memref<1x4x8x8xf32, #tpu.memory_space<vmem>>, %arg4: memref<1x4x8x8xf32, #tpu.memory_space<vmem>>, %arg5: memref<1x4x8x8xf32, #tpu.memory_space<vmem>>, %arg6: memref<1x32x32xf32, #tpu.memory_space<vmem>>, %arg7: memref<1x32xf32, #tpu.memory_space<vmem>>, %arg8: memref<1x8x32xf32, #tpu.memory_space<vmem>>, %arg9: memref<1x8x32xf32, #tpu.memory_space<vmem>>) attributes {dimension_semantics = [#tpu.dimension_semantics<parallel>, #tpu.dimension_semantics<parallel>, #tpu.dimension_semantics<arbitrary>], iteration_bounds = array<i64: 2, 1, 1>, scalar_prefetch = 0 : i64, scratch_operands = 1 : i64, tpu.core_type = #tpu.core_type<tc>, window_params = [{transform_indices = @transform_0, window_bounds = array<i64: 1, 4, 8, 8>}, {transform_indices = @transform_1, window_bounds = array<i64: 1, 4, 8, 8>}, {transform_indices = @transform_2, window_bounds = array<i64: 1, 4, 8, 8>}, {pipeline_mode = #tpu.pipeline_mode<synchronous>, transform_indices = @transform_3, window_bounds = array<i64: 1, 32, 32>}, {pipeline_mode = #tpu.pipeline_mode<synchronous>, transform_indices = @transform_4, window_bounds = array<i64: 1, 32>}, {transform_indices = @transform_5, window_bounds = array<i64: 1, 8, 32>}]} {
    %c0 = arith.constant 0 : index
    %c0_0 = arith.constant 0 : index
    %c0_1 = arith.constant 0 : index
    %c0_2 = arith.constant 0 : index
    %0 = vector.load %arg3[%c0, %c0_0, %c0_1, %c0_2] : memref<1x4x8x8xf32, #tpu.memory_space<vmem>>, vector<1x4x8x8xf32>
    %1 = vector.shape_cast %0 : vector<1x4x8x8xf32> to vector<4x8x8xf32>
    %c0_3 = arith.constant 0 : index
    %c0_4 = arith.constant 0 : index
    %c0_5 = arith.constant 0 : index
    %c0_6 = arith.constant 0 : index
    %2 = vector.load %arg4[%c0_3, %c0_4, %c0_5, %c0_6] : memref<1x4x8x8xf32, #tpu.memory_space<vmem>>, vector<1x4x8x8xf32>
    %3 = vector.shape_cast %2 : vector<1x4x8x8xf32> to vector<4x8x8xf32>
    %c0_7 = arith.constant 0 : index
    %c0_8 = arith.constant 0 : index
    %c0_9 = arith.constant 0 : index
    %c0_10 = arith.constant 0 : index
    %4 = vector.load %arg5[%c0_7, %c0_8, %c0_9, %c0_10] : memref<1x4x8x8xf32, #tpu.memory_space<vmem>>, vector<1x4x8x8xf32>
    %5 = vector.shape_cast %4 : vector<1x4x8x8xf32> to vector<4x8x8xf32>
    %cst = arith.constant dense<0.000000e+00> : vector<4x8x8xf32>
    %6 = tpu.matmul %1, %3, %cst {dimension_numbers = #tpu.dot_dimension_numbers<[2], [2], [1], [1], [0, 0, 0, 1, 1, 1], [0], [0]>} : vector<4x8x8xf32>, vector<4x8x8xf32>, vector<4x8x8xf32> -> vector<4x8x8xf32>
    %cst_11 = arith.constant dense<0xFF800000> : vector<4x8xf32>
    %7 = vector.multi_reduction <maximumf>, %6, %cst_11 [2] : vector<4x8x8xf32> to vector<4x8xf32>
    %8 = vector.shape_cast %7 : vector<4x8xf32> to vector<4x8x1xf32>
    %9 = vector.broadcast %8 : vector<4x8x1xf32> to vector<4x8x8xf32>
    %10 = arith.subf %6, %9 : vector<4x8x8xf32>
    %11 = math.exp %10 : vector<4x8x8xf32>
    %cst_12 = arith.constant dense<0.000000e+00> : vector<4x8xf32>
    %12 = vector.multi_reduction <add>, %11, %cst_12 [2] : vector<4x8x8xf32> to vector<4x8xf32>
    %13 = vector.shape_cast %12 : vector<4x8xf32> to vector<4x8x1xf32>
    %cst_13 = arith.constant dense<0.000000e+00> : vector<4x8x8xf32>
    %14 = tpu.matmul %11, %5, %cst_13 {dimension_numbers = #tpu.dot_dimension_numbers<[2], [1], [1], [2], [0, 0, 0, 1, 1, 2], [0], [0]>} : vector<4x8x8xf32>, vector<4x8x8xf32>, vector<4x8x8xf32> -> vector<4x8x8xf32>
    %15 = tpu.reciprocal %13 : vector<4x8x1xf32> -> vector<4x8x1xf32>
    %16 = vector.broadcast %15 : vector<4x8x1xf32> to vector<4x8x8xf32>
    %17 = arith.mulf %14, %16 : vector<4x8x8xf32>
    %18 = vector.extract_strided_slice %17 {offsets = [0, 0, 0], sizes = [1, 8, 8], strides = [1, 1, 1]} : vector<4x8x8xf32> to vector<1x8x8xf32>
    %19 = vector.shape_cast %18 : vector<1x8x8xf32> to vector<8x8xf32>
    %20 = arith.index_cast %arg2 : i32 to index
    %c0_14 = arith.constant 0 : index
    %c0_15 = arith.constant 0 : index
    %21 = vector.load %arg9[%20, %c0_14, %c0_15] : memref<1x8x32xf32, #tpu.memory_space<vmem>>, vector<1x8x8xf32>
    %22 = vector.shape_cast %21 : vector<1x8x8xf32> to vector<8x8xf32>
    %23 = vector.shape_cast %19 : vector<8x8xf32> to vector<1x8x8xf32>
    tpu.vector_store %arg9[%20, %c0_14, %c0_15], %23 {strides = array<i32>} : memref<1x8x32xf32, #tpu.memory_space<vmem>>, vector<1x8x8xf32>,
    %24 = vector.extract_strided_slice %17 {offsets = [1, 0, 0], sizes = [1, 8, 8], strides = [1, 1, 1]} : vector<4x8x8xf32> to vector<1x8x8xf32>
    %25 = vector.shape_cast %24 : vector<1x8x8xf32> to vector<8x8xf32>
    %26 = arith.index_cast %arg2 : i32 to index
    %c0_16 = arith.constant 0 : index
    %c8 = arith.constant 8 : index
    %27 = vector.load %arg9[%26, %c0_16, %c8] : memref<1x8x32xf32, #tpu.memory_space<vmem>>, vector<1x8x8xf32>
    %28 = vector.shape_cast %27 : vector<1x8x8xf32> to vector<8x8xf32>
    %29 = vector.shape_cast %25 : vector<8x8xf32> to vector<1x8x8xf32>
    tpu.vector_store %arg9[%26, %c0_16, %c8], %29 {strides = array<i32>} : memref<1x8x32xf32, #tpu.memory_space<vmem>>, vector<1x8x8xf32>,
    %30 = vector.extract_strided_slice %17 {offsets = [2, 0, 0], sizes = [1, 8, 8], strides = [1, 1, 1]} : vector<4x8x8xf32> to vector<1x8x8xf32>
    %31 = vector.shape_cast %30 : vector<1x8x8xf32> to vector<8x8xf32>
    %32 = arith.index_cast %arg2 : i32 to index
    %c0_17 = arith.constant 0 : index
    %c16 = arith.constant 16 : index
    %33 = vector.load %arg9[%32, %c0_17, %c16] : memref<1x8x32xf32, #tpu.memory_space<vmem>>, vector<1x8x8xf32>
    %34 = vector.shape_cast %33 : vector<1x8x8xf32> to vector<8x8xf32>
    %35 = vector.shape_cast %31 : vector<8x8xf32> to vector<1x8x8xf32>
    tpu.vector_store %arg9[%32, %c0_17, %c16], %35 {strides = array<i32>} : memref<1x8x32xf32, #tpu.memory_space<vmem>>, vector<1x8x8xf32>,
    %36 = vector.extract_strided_slice %17 {offsets = [3, 0, 0], sizes = [1, 8, 8], strides = [1, 1, 1]} : vector<4x8x8xf32> to vector<1x8x8xf32>
    %37 = vector.shape_cast %36 : vector<1x8x8xf32> to vector<8x8xf32>
    %38 = arith.index_cast %arg2 : i32 to index
    %c0_18 = arith.constant 0 : index
    %c24 = arith.constant 24 : index
    %39 = vector.load %arg9[%38, %c0_18, %c24] : memref<1x8x32xf32, #tpu.memory_space<vmem>>, vector<1x8x8xf32>
    %40 = vector.shape_cast %39 : vector<1x8x8xf32> to vector<8x8xf32>
    %41 = vector.shape_cast %37 : vector<8x8xf32> to vector<1x8x8xf32>
    tpu.vector_store %arg9[%38, %c0_18, %c24], %41 {strides = array<i32>} : memref<1x8x32xf32, #tpu.memory_space<vmem>>, vector<1x8x8xf32>,
    %c0_i32 = arith.constant 0 : i32
    %42 = arith.cmpi eq, %arg2, %c0_i32 : i32
    %43 = arith.extui %42 : i1 to i32
    %c0_i32_19 = arith.constant 0 : i32
    %44 = arith.cmpi ne, %43, %c0_i32_19 : i32
    scf.if %44 {
      %c0_20 = arith.constant 0 : index
      %c0_21 = arith.constant 0 : index
      %c0_22 = arith.constant 0 : index
      %45 = vector.load %arg9[%c0_20, %c0_21, %c0_22] : memref<1x8x32xf32, #tpu.memory_space<vmem>>, vector<1x8x32xf32>
      %46 = vector.shape_cast %45 : vector<1x8x32xf32> to vector<8x32xf32>
      %c0_23 = arith.constant 0 : index
      %c0_24 = arith.constant 0 : index
      %c0_25 = arith.constant 0 : index
      %47 = vector.load %arg6[%c0_23, %c0_24, %c0_25] : memref<1x32x32xf32, #tpu.memory_space<vmem>>, vector<1x32x32xf32>
      %48 = vector.shape_cast %47 : vector<1x32x32xf32> to vector<32x32xf32>
      %cst_26 = arith.constant dense<0.000000e+00> : vector<8x32xf32>
      %49 = tpu.matmul %46, %48, %cst_26 {dimension_numbers = #tpu.dot_dimension_numbers<[1], [0], [0], [1], [0, 0, 1, 1], [], []>} : vector<8x32xf32>, vector<32x32xf32>, vector<8x32xf32> -> vector<8x32xf32>
      %c0_27 = arith.constant 0 : index
      %c0_28 = arith.constant 0 : index
      %50 = vector.load %arg7[%c0_27, %c0_28] : memref<1x32xf32, #tpu.memory_space<vmem>>, vector<1x32xf32>
      %51 = vector.broadcast %50 : vector<1x32xf32> to vector<8x32xf32>
      %52 = arith.addf %49, %51 : vector<8x32xf32>
      %c0_29 = arith.constant 0 : index
      %c0_30 = arith.constant 0 : index
      %c0_31 = arith.constant 0 : index
      %53 = vector.load %arg8[%c0_29, %c0_30, %c0_31] : memref<1x8x32xf32, #tpu.memory_space<vmem>>, vector<1x8x32xf32>
      %54 = vector.shape_cast %53 : vector<1x8x32xf32> to vector<8x32xf32>
      %55 = vector.shape_cast %52 : vector<8x32xf32> to vector<1x8x32xf32>
      tpu.vector_store %arg8[%c0_29, %c0_30, %c0_31], %55 {strides = array<i32>} : memref<1x8x32xf32, #tpu.memory_space<vmem>>, vector<1x8x32xf32>,
    } else {
    }
    return
  }
  func.func @transform_0(%arg0: i32, %arg1: i32, %arg2: i32) -> (i32, i32, i32, i32) {
    %c0_i32 = arith.constant 0 : i32
    %c0_i32_0 = arith.constant 0 : i32
    return %arg0, %arg2, %arg1, %c0_i32 : i32, i32, i32, i32
  }
  func.func @transform_1(%arg0: i32, %arg1: i32, %arg2: i32) -> (i32, i32, i32, i32) {
    %c0_i32 = arith.constant 0 : i32
    %c0_i32_0 = arith.constant 0 : i32
    %c0_i32_1 = arith.constant 0 : i32
    return %arg0, %arg2, %c0_i32, %c0_i32_0 : i32, i32, i32, i32
  }
  func.func @transform_2(%arg0: i32, %arg1: i32, %arg2: i32) -> (i32, i32, i32, i32) {
    %c0_i32 = arith.constant 0 : i32
    %c0_i32_0 = arith.constant 0 : i32
    %c0_i32_1 = arith.constant 0 : i32
    return %arg0, %arg2, %c0_i32, %c0_i32_0 : i32, i32, i32, i32
  }
  func.func @transform_3(%arg0: i32, %arg1: i32, %arg2: i32) -> (i32, i32, i32) {
    %c0_i32 = arith.constant 0 : i32
    %c0_i32_0 = arith.constant 0 : i32
    %c0_i32_1 = arith.constant 0 : i32
    %c0_i32_2 = arith.constant 0 : i32
    return %c0_i32, %c0_i32_0, %c0_i32_1 : i32, i32, i32
  }
  func.func @transform_4(%arg0: i32, %arg1: i32, %arg2: i32) -> (i32, i32) {
    %c0_i32 = arith.constant 0 : i32
    %c0_i32_0 = arith.constant 0 : i32
    %c0_i32_1 = arith.constant 0 : i32
    return %c0_i32, %c0_i32_0 : i32, i32
  }
  func.func @transform_5(%arg0: i32, %arg1: i32, %arg2: i32) -> (i32, i32, i32) {
    %c0_i32 = arith.constant 0 : i32
    %c0_i32_0 = arith.constant 0 : i32
    return %arg0, %arg1, %c0_i32 : i32, i32, i32
  }
}

</mosaic_0001>

<bundles_post_ra>
// kernel: self_attention.1
= control target key start
LH: loop header
LB: loop body
LE: loop exit
PB: predicated region body
PF: predicated region fallthrough
CT: control target
= control target key end

     0   :  { %10 = vsyncpa [#allocation4], 0  ;;  %s1724_s0 = inlined_call_operand.vmem [shape: f32[2,4,8,8], index: 0, kind: input, shape index: {}]   ;;  %s1725_s1 = inlined_call_operand.vmem [shape: f32[2,4,8,8], index: 1, kind: input, shape index: {}]   ;;  %s1726_s2 = inlined_call_operand.vmem [shape: f32[2,4,8,8], index: 2, kind: input, shape index: {}]   ;;  %s1727_s3 = inlined_call_operand.vmem [shape: f32[1,32,32], index: 3, kind: input, shape index: {}]   ;;  %s1728_s4 = inlined_call_operand.vmem [shape: f32[1,32], index: 4, kind: input, shape index: {}]   ;;  %s1729_s5 = inlined_call_operand.hbm [shape: f32[2,8,32], index: 5, kind: output, shape index: {}]  }
   0x1   :  { %12 = vsyncpa [#allocation4 + $0x1], 0  ;;  %s1536_s18 = smov 0   ;;  %s1538_s19 = smov 0  }
   0x2   :  { %s1540_s20 = smov 0   ;;  %s1542_s21 = smov 0  }
   0x3   :  { %s1544_s22 = smov 0   ;;  %s1546_s23 = smov 0  }
   0x4 LB: > { %s1241_s24 = sadd.s32 4294967295, %s1498_s23   ;;  %s1242_s25 = sadd.s32 4294967294, %s1498_s23   ;;  %s1498_s23 = sphi %s1546_s23, %s18_s23   ;;  %s1494_s22 = sphi %s1544_s22, %s1736_s22   ;;  %s1490_s21 = sphi %s1542_s21, %s1735_s21   ;;  %s1486_s20 = sphi %s1540_s20, %s1734_s20   ;;  %s1482_s19 = sphi %s1538_s19, %s1733_s19   ;;  %s1478_s18 = sphi %s1536_s18, %s1732_s18  }
   0x5   : > { %s37_s26 = sadd.s32 1, %s1494_s22  ;;  %s174_s27 = sadd.s32 1, %s1486_s20 }
   0x6   : > { %p39_p0 = scmp.ge.s32.totalorder %s37_s26, 2  ;;  %p184_p1 = scmp.ne.s32.totalorder %s1486_s20, %s1482_s19 }
   0x7   : > { %p185_p2 = scmp.eq.s32.totalorder %s1241_s24, 1  ;;  %p190_p3 = scmp.ne.s32.totalorder %s1482_s19, %s1478_s18 }
   0x8   : > { %s1738_s26 = smov (%p39_p0, %s37_s26), 0  ;;  %p191_p5 = scmp.eq.s32.totalorder %s1242_s25, 1 }
   0x9   : > { %p1576_p4 = por %p185_p2, %p184_p1  ;;  %s169_s29 = ssub.s32 %s1494_s22, %s1738_s26 }
   0xa   : > { %p1245_p6 = scmp.ge.s32.totalorder %s1498_s23, 1  ;;  %p172_p7 = scmp.eq.s32.totalorder %s169_s29, 0 }
   0xb   : > { %p1583_p8 = por %p191_p5, %p190_p3  ;;  %p257_p9 = scmp.lt.s32.totalorder %s1498_s23, 3 }
   0xc   : > { %s1589_s6 = scalar_select %p172_p7, %s1486_s20, %s174_s27  }
   0xd   : > { %p258_p10 = pnand %p1245_p6, %p257_p9 }
   0xe   : > { %p311_p11 = scmp.lt.s32.totalorder (!%p258_p10), %s1490_s21, 1  ;;  %s1503_s12 = smov (!%p258_p10), 16  }
   0xf   : > { %261 = sbr.rel (%p258_p10) target bundleno = 913 (0x391), region = 40  ;;  %s1504_s13 = smov (!%p258_p10), 24  }
  0x10   : > { %s1268_s24 = sshll.u32 (!%p258_p10), %s1490_s21, 7 }
  0x14   : > { %v1500_v0 = vmov 0.0   ;;  %s312_s7 = scalar_select %p311_p11, %s1490_s21, 1  ;;  %vm1501_vm0 = vmmov 0   ;;  %vm355_vm1 = vcmask 64512   ;;  %v1025_v49 = vld [vmem:[%s1727_s3 + $0x18] sm:$0xff]  ;;  %v1024_v50 = vld [vmem:[%s1727_s3 + $0x10] sm:$0xff] }
  0x15   : > { %1295 = vmatprep.subr.mxu1 %v1500_v0  ;;  %1305 = vmatprep.subr.mxu0 %v1500_v0  ;;  %v1023_v53 = vld [vmem:[%s1727_s3 + $0x8] sm:$0xff]  ;;  %v1022_v56 = vld [vmem:[%s1727_s3] sm:$0xff]  ;;  %vm1003_vm2 = vcmask 130112   ;;  %vm1009_vm3 = vcmask 195712   ;;  %vm1015_vm4 = vcmask 261312   ;;  %vm1033_vm5 = vcmask 261120  }
  0x16   : > { %1297 = vmatprep.mubr.msk.f32.mxu1 %vm1501_vm0, %v1500_v0  ;;  %1307 = vmatprep.mubr.msk.f32.mxu0 %vm1501_vm0, %v1500_v0  ;;  %s1599_s8 = sshll.u32 %s312_s7, 5 }
  0x17   : > { %s331_s11 = scalar_lea.vmem %s1725_s1, %s1599_s8  ;;  %s321_s14 = scalar_lea.vmem %s1724_s0, %s1599_s8 }
  0x18   : > { %v347_v1 = vld [vmem:[%s331_s11] sm:$0xff]  ;;  %v349_v2 = vld [vmem:[%s331_s11 + $0x10] sm:$0xff]  ;;  %v348_v5 = vld [vmem:[%s331_s11 + $0x8] sm:$0xff]  ;;  %s1637_s17 = scalar_lea.vmem %s1726_s2, %s1599_s8  ;;  %s1684_s8 = scalar_lea.hbm %s1729_s5, %s1268_s24 }
  0x19   : > { %1296 = vmatpush3.xpose.msk.msra.mxu1 %vm355_vm1, %v347_v1  ;;  %1306 = vmatpush3.xpose.msk.msra.mxu0 %vm355_vm1, %v349_v2  ;;  %v343_v3 = vld [vmem:[%s321_s14] sm:$0xff]  ;;  %v345_v4 = vld [vmem:[%s321_s14 + $0x10] sm:$0xff]  ;;  %v344_v6 = vld [vmem:[%s321_s14 + $0x8] sm:$0xff] }
  0x1a   : > { %1300 = vmatprep.subr.mxu1 %v1500_v0  ;;  %1315 = vmatprep.subr.mxu0 %v1500_v0  ;;  %v350_v7 = vld [vmem:[%s331_s11 + $0x18] sm:$0xff]  ;;  %v351_v21 = vld [vmem:[%s1637_s17] sm:$0xff]  ;;  %v352_v22 = vld [vmem:[%s1637_s17 + $0x8] sm:$0xff]  ;;  %s1502_s11 = smov 8  }
  0x1b   : > { %v346_v8 = vld [vmem:[%s321_s14 + $0x18] sm:$0xff]  ;;  %v353_v36 = vld [vmem:[%s1637_s17 + $0x10] sm:$0xff]  ;;  %s307_s14 = sand.u32 1, %s1482_s19  }
  0x1c   : > { %1298 = vmatmul.mubr.msk.f32.vlgmr.msra.gmra.mxu1 %vm355_vm1, %v343_v3  ;;  %1308 = vmatmul.mubr.msk.f32.vlgmr.msra.gmra.mxu0 %vm355_vm1, %v345_v4  ;;  %v354_v39 = vld [vmem:[%s1637_s17 + $0x18] sm:$0xff]  ;;  %s1246_s15 = sshll.u32 %s307_s14, 3  ;;  %s1109_s9 = scalar_lea.sflag [#allocation4], %s307_s14 }
  0x1d   : > { %1301 = vmatpush3.xpose.msk.msra.mxu1 %vm355_vm1, %v348_v5  ;;  %1302 = vmatprep.mubr.msk.f32.mxu1 %vm1501_vm0, %v1500_v0  ;;  %s309_s25 = scalar_lea.vmem [#allocation3], %s1246_s15 }
  0x1e   : > { %1310 = vmatprep.subr.mxu1 %v1500_v0  ;;  %1317 = vmatprep.mubr.msk.f32.mxu0 %vm1501_vm0, %v1500_v0  ;;  %s1123_s27 = sshll.u32 %s309_s25, 4  ;;  %s1124_s27 = int_to_ptr.vmem [resolvable:$true] %s1123_s27 }
  0x1f   : > { %1316 = vmatpush3.msra.mxu0 %v351_v21  ;;  %s1422_s10 = scalar_lea.vmem %s1124_s27, 128 }
  0x20   : > { %1303 = vmatmul.mubr.msk.f32.vlgmr.msra.gmra.mxu1 %vm355_vm1, %v344_v6  ;;  %1325 = vmatprep.subr.mxu0 %v1500_v0  ;;  %p1423_p12 = scmp.ne.s32.totalorder %s1124_s27, %s1422_s10 }
  0x21   : > { %1311 = vmatpush3.xpose.msk.msra.mxu1 %vm355_vm1, %v350_v7  ;;  %1312 = vmatprep.mubr.msk.f32.mxu1 %vm1501_vm0, %v1500_v0 }
  0x22   : > { %1320 = vmatprep.subr.mxu1 %v1500_v0  ;;  %p1424_p13 = pnand %p1423_p12, %p1576_p4 }
  0x24   : > { %1313 = vmatmul.mubr.msk.f32.vlgmr.msra.gmra.mxu1 %vm355_vm1, %v346_v8  ;;  %p1425_p0 = pneg %p1424_p13 }
  0x25   : > { %1322 = vmatprep.mubr.msk.f32.mxu1 %vm1501_vm0, %v1500_v0  ;;  %1321 = vmatpush3.msra.mxu1 %v352_v22 }
  0x26   : > { %1330 = vmatprep.subr.mxu1 %v1500_v0 }
  0xdc   : > { %v428_v9 = vpop.f32.mrf.mxu1  ;;  %v580_v10 = vpop.f32.mrf.mxu0 }
  0xdd   : > { %v666_v11 = vsel %vm355_vm1, %v580_v10, -inf  ;;  %v660_v12 = vsel %vm355_vm1, %v428_v9, -inf }
  0xde   : > { %667 = vmax.xlane.f32.xlu1 %v666_v11  ;;  %661 = vmax.xlane.f32.xlu0 %v660_v12  ;;  %v1299_v13 = vpop.f32.mrf.mxu1  ;;  %v1309_v14 = vpop.f32.mrf.mxu0 }
  0xe0   : > { %v504_v15 = vpop.f32.mrf.mxu1 }
  0xe1   : > { %v663_v16 = vsel %vm355_vm1, %v504_v15, -inf }
  0xe2   : > { %664 = vmax.xlane.f32.xlu0 %v663_v16  ;;  %v1304_v17 = vpop.f32.mrf.mxu1 }
  0xe4   : > { %v656_v18 = vpop.f32.mrf.mxu1 }
  0xe5   : > { %v669_v19 = vsel %vm355_vm1, %v656_v18, -inf }
  0xe6   : > { %670 = vmax.xlane.f32.xlu1 %v669_v19  ;;  %v1314_v20 = vpop.f32.mrf.mxu1 }
 0x167   : > { %v668_v23 = vpop.xlane.xlu1 %667  ;;  %v662_v24 = vpop.xlane.xlu0 %661 }
 0x168   : > { %v674_v25 = vsub.f32 %v580_v10, %v668_v23  ;;  %v672_v26 = vsub.f32 %v428_v9, %v662_v24  ;;  %v1265_v9 = vld [vmem:[%s1728_s4] ss:$0 sm:$0xff] }
 0x16a   : > { %v680_v27 = vmul.f32 1.442695, %v674_v25  ;;  %v676_v28 = vmul.f32 1.442695, %v672_v26 }
 0x16b   : > { %v665_v29 = vpop.xlane.xlu0 %664 }
 0x16c   : > { %1406 = vpow2.f32 %v680_v27  ;;  %v673_v30 = vsub.f32 %v504_v15, %v665_v29 }
 0x16d   : > { %1408 = vpow2.f32 %v676_v28 }
 0x16e   : > { %v678_v31 = vmul.f32 1.442695, %v673_v30 }
 0x16f   : > { %v671_v32 = vpop.xlane.xlu1 %670 }
 0x170   : > { %1410 = vpow2.f32 %v678_v31  ;;  %v675_v33 = vsub.f32 %v656_v18, %v671_v32 }
 0x172   : > { %v682_v34 = vmul.f32 1.442695, %v675_v33 }
 0x174   : > { %1412 = vpow2.f32 %v682_v34 }
 0x179   : > { %v1407_v35 = vpop.eup %1406 }
 0x17a   : > { %v1409_v37 = vpop.eup %1408  ;;  %v690_v38 = vsel %vm355_vm1, %v1407_v35, 0.0 }
 0x17b   : > { %1318 = vmatmul.mubr.msk.f32.vlgmr.msra.gmra.mxu0 %vm355_vm1, %v1409_v37  ;;  %691 = vadd.xlane.f32.xlu1 %v690_v38  ;;  %v684_v42 = vsel %vm355_vm1, %v1409_v37, 0.0 }
 0x17c   : > { %1326 = vmatpush3.msra.mxu0 %v353_v36  ;;  %1327 = vmatprep.mubr.msk.f32.mxu0 %vm1501_vm0, %v1500_v0 }
 0x17d   : > { %v1411_v40 = vpop.eup %1410  ;;  %1335 = vmatprep.subr.mxu0 %v1500_v0 }
 0x17e   : > { %1323 = vmatmul.mubr.msk.f32.vlgmr.msra.gmra.mxu1 %vm355_vm1, %v1411_v40  ;;  %v687_v41 = vsel %vm355_vm1, %v1411_v40, 0.0 }
 0x17f   : > { %1328 = vmatmul.mubr.msk.f32.vlgmr.msra.gmra.mxu0 %vm355_vm1, %v1407_v35  ;;  %1331 = vmatpush3.msra.mxu1 %v354_v39 }
 0x180   : > { %688 = vadd.xlane.f32.xlu0 %v687_v41  ;;  %685 = vadd.xlane.f32.xlu1 %v684_v42 }
 0x181   : > { %v1413_v43 = vpop.eup %1412  ;;  %1332 = vmatprep.mubr.msk.f32.mxu1 %vm1501_vm0, %v1500_v0  ;;  %1343 = vmatprep.mubr.msk.f32.mxu0 %vm1501_vm0, %v1500_v0 }
 0x182   : > { %1333 = vmatmul.mubr.msk.f32.vlgmr.msra.gmra.mxu1 %vm355_vm1, %v1413_v43  ;;  %v693_v44 = vsel %vm355_vm1, %v1413_v43, 0.0  ;;  %1336 = vmatpush3.msra.mxu0 %v1025_v49 }
 0x183   : > { %1337 = vmatprep.subr.mxu0 %v1500_v0 }
 0x184   : > { %694 = vadd.xlane.f32.xlu0 %v693_v44  ;;  %1338 = vmatpush3.msra.mxu0 %v1024_v50 }
 0x185   : > { %1339 = vmatprep.subr.mxu0 %v1500_v0 }
 0x186   : > { %1340 = vmatpush3.msra.mxu0 %v1023_v53 }
 0x187   : > { %1341 = vmatprep.subr.mxu0 %v1500_v0 }
 0x188   : > { %1342 = vmatpush3.msra.mxu0 %v1022_v56 }
 0x204   : > { %v692_v45 = vpop.xlane.xlu1 %691 }
 0x209   : > { %v686_v46 = vpop.xlane.xlu1 %685  ;;  %v689_v47 = vpop.xlane.xlu0 %688 }
 0x20a   : > { %1414 = vrcp.f32 %v686_v46 }
 0x20b   : > { %1416 = vrcp.f32 %v689_v47 }
 0x20c   : > { %1418 = vrcp.f32 %v692_v45 }
 0x20d   : > { %v695_v48 = vpop.xlane.xlu0 %694 }
 0x20e   : > { %1420 = vrcp.f32 %v695_v48 }
 0x217   : > { %v1415_v51 = vpop.eup %1414 }
 0x218   : > { %v1417_v57 = vpop.eup %1416 }
 0x219   : > { %v1419_v59 = vpop.eup %1418 }
 0x21b   : > { %v1421_v2 = vpop.eup %1420 }
 0x23b   : > { %v765_v52 = vpop.f32.mrf.mxu0 }
 0x23c   : > { %v992_v54 = vmul.f32 %v1415_v51, %v765_v52 }
 0x23d   : > { %v1319_v55 = vpop.f32.mrf.mxu0 }
 0x23e   : > { %998 = vst.msk [vmem:[#allocation2] sm:$0xff] %vm355_vm1, %v992_v54  ;;  %v838_v58 = vpop.f32.mrf.mxu1 }
 0x23f   : > { %v993_v60 = vmul.f32 %v1417_v57, %v838_v58  ;;  %v911_v61 = vpop.f32.mrf.mxu0 }
 0x240   : > { %v994_v62 = vmul.f32 %v1419_v59, %v911_v61  ;;  %v1324_v63 = vpop.f32.mrf.mxu1 }
 0x241   : > { %v1329_v1 = vpop.f32.mrf.mxu0  ;;  %1000 = vrot.lane.b32.xlu0 %v993_v60, %s1502_s11  ;;  %s1505_s11 = smov [#allocation3]  }
 0x242   : > { %1006 = vrot.lane.b32.xlu1 %v994_v62, %s1503_s12  ;;  %v984_v3 = vpop.f32.mrf.mxu1  ;;  %s1426_s21 = sshll.u32 %s1505_s11, 4  ;;  %s1427_s21 = int_to_ptr.vmem [resolvable:$false] %s1426_s21 }
 0x243   : > { %v995_v4 = vmul.f32 %v1421_v2, %v984_v3  ;;  %s1428_s12 = scalar_lea.vmem %s1427_s21, 256  ;;  %p1429_p1 = scmp.lt.s32.totalorder %s1124_s27, %s1427_s21 }
 0x244   : > { %v1334_v5 = vpop.f32.mrf.mxu1  ;;  %p1430_p2 = scmp.lt.s32.totalorder %s1428_s12, %s1422_s10 }
 0x246   : > { %1012 = vrot.lane.b32.xlu1 %v995_v4, %s1504_s13  ;;  %p1431_p3 = por %p1430_p2, %p1429_p1 }
 0x248   : > { %p1432_p5 = pnand %p1431_p3, %p1425_p0 }
 0x2b3   : > { %v1001_v6 = vpop.permute.xlu0 %1000 }
 0x2b4   : > { %v1007_v0 = vpop.permute.xlu1 %1006  ;;  %1004 = vst.msk [vmem:[#allocation2] sm:$0xff] %vm1003_vm2, %v1001_v6 }
 0x2b5   : > { %1010 = vst.msk [vmem:[#allocation2] sm:$0xff] %vm1009_vm3, %v1007_v0 }
 0x2b8   : > { %v1013_v7 = vpop.permute.xlu1 %1012 }
 0x2b9   : > { %1016 = vst.msk [vmem:[#allocation2] sm:$0xff] %vm1015_vm4, %v1013_v7 }
 0x2c0   : > { %v1021_v8 = vld [vmem:[#allocation2] sm:$0xff] }
 0x2c1   : > { %1344 = vmatmul.mubr.msk.f32.vlgmr.msra.gmra.mxu0 %vm1033_vm5, %v1021_v8 }
 0x381   : > { %v1103_v10 = vpop.f32.mrf.mxu0 }
 0x382   : > { %v1104_v11 = vadd.f32 %v1265_v9, %v1103_v10 }
 0x383   : > { %v1345_v12 = vpop.f32.mrf.mxu0 }
 0x384   : > { %1107 = vst.msk [vmem:[%s309_s25] sm:$0xff] %vm1033_vm5, %v1104_v11 }
 0x385   : > { %1435 = shalt.err (!%p1432_p5)
}
 0x386   : > { %s1436_s13 = scalar_lea.hbm %s1684_s8, 128  ;;  %s1440_s16 = scalar_lea.hbm %s1729_s5, 256 }
 0x387   : > { %p1437_p6 = scmp.ne.s32.totalorder %s1684_s8, %s1436_s13  ;;  %p1441_p10 = scmp.lt.s32.totalorder %s1684_s8, %s1729_s5 }
 0x388   : > { %p1442_p11 = scmp.lt.s32.totalorder %s1440_s16, %s1436_s13 }
 0x389   : > { %p1438_p7 = pnand %p1437_p6, %p1576_p4 }
 0x38a   : > { %p1443_p12 = por %p1442_p11, %p1441_p10 }
 0x38b   : > { %p1439_p9 = pneg %p1438_p7 }
 0x38d   : > { %p1444_p13 = pnand %p1443_p12, %p1439_p9 }
 0x38f   : > { %1447 = shalt.err (!%p1444_p13)
}
 0x390   : > { %1346 = dma.vmem_to_hbm [thread:$0]  (%p1576_p4), %s1124_s27, 128, %s1684_s8, %s1109_s9  }
 0x391 PF: > { %p1352_p0 = scmp.ge.s32.totalorder %s1498_s23, 2  ;;  %s1135_s25 = sand.u32 1, %s1478_s18  }
 0x392   : > { %s1136_s29 = scalar_lea.sflag [#allocation4], %s1135_s25 }
 0x393   : > { %p1349_p1 = pnand %p1352_p0, %p1583_p8 }
 0x395   : > { %p1350_p2 = pneg %p1349_p1 }
 0x397   : > { %1473 = dma.done.wait (%p1350_p2), %s1136_s29, 128  }
 0x398   : > { %1475 = vsyncadd (%p1350_p2), %s1136_s29, 4294967168  ;;  %s18_s23 = sadd.s32 1, %s1498_s23   ;;  %s1732_s18 = smov %s1482_s19 }
 0x399   : > { %p15_p3 = scmp.ge.s32.totalorder %s18_s23, 4   ;;  %s1733_s19 = smov %s1486_s20 }
 0x39a   : > { %s1734_s20 = smov %s1589_s6  ;;  %s1735_s21 = smov %s1494_s22 }
 0x39b   : > { %s1736_s22 = smov %s1738_s26  ;;  %17 = sbr.rel (!%p15_p3) target bundleno = 4 (0x4), region = 86 }
 0x3a0   :  { %1141 = vsyncpa [#allocation4], 1 }
 0x3a1   :  { %1143 = vsyncpa [#allocation4 + $0x1], 1 }

</bundles_post_ra>
